<compile_context>
chip_gen: v5e
topology: v5e:2x2
jax: 0.10.0
libtpu: 0.0.40
codegen_flags: <defaults>
</compile_context>

<pallas_src>
import functools

import jax
import jax.numpy as jnp
from jax.experimental import pallas as pl
from jax.experimental.pallas import tpu as pltpu


def _fuse_kernel(xs_ref, xf_ref, w_ref, bias_ref, o_ref, *,
                 K, alpha, pad, T_f, C_slow, merge_taps):
    """One grid step = one batch sample.

    xs_ref:   (1, C_slow, T_out, HW)          slow pathway (copied through)
    xf_ref:   (1, C_in,  T_f,  HW)            fast pathway (conv input)
    w_ref:    (C_out, K*C_in)   f32           conv weight with BN scale folded
                                              in, column layout k*C_in + c
    bias_ref: (C_out, 1)        f32           folded BN bias
    o_ref:    (1, C_slow + C_out, T_out, HW)  fused concat output
    """
    C_out = w_ref.shape[0]
    C_in = xf_ref.shape[1]
    T_out = o_ref.shape[2]
    HW = o_ref.shape[3]

    # Fused channel concat: slow-pathway channels pass straight through.
    o_ref[0, :C_slow, :, :] = xs_ref[0, :, :, :].astype(o_ref.dtype)

    w = w_ref[...]                                          # (C_out, K*C_in)
    # Hoist the bias broadcast out of the t loop (JAX does not CSE it).
    bias = jnp.broadcast_to(bias_ref[...], (C_out, HW))
    zero_tap = jnp.zeros((C_in, HW), jnp.float32)

    # Strided temporal conv + bias + ReLU.  T_out and K are small for
    # SlowFast, so both loops are statically unrolled: every load/store below
    # has static addresses and zero-padded taps are resolved at trace time.
    for t in range(T_out):
        if merge_taps:
            # Gather the K taps into one (K*C_in, HW) operand -> one MXU
            # matmul per output frame (contraction K*C_in instead of K
            # separate contractions of C_in).  Each tap is exactly C_in
            # sublane rows, so the concat is pure layout, no lane movement.
            taps = []
            for k in range(K):
                idx = t * alpha + k - pad
                if 0 <= idx < T_f:
                    taps.append(xf_ref[0, :, idx, :].astype(jnp.float32))
                else:
                    taps.append(zero_tap)                   # zero padding
            x_cat = jnp.concatenate(taps, axis=0)           # (K*C_in, HW)
            acc = jnp.dot(w, x_cat, preferred_element_type=jnp.float32)
        else:
            # Fallback: per-tap matmuls (used when C_in is not a sublane
            # multiple or the gathered operand would be too large).
            acc = jnp.zeros((C_out, HW), jnp.float32)
            for k in range(K):
                idx = t * alpha + k - pad
                if idx < 0 or idx >= T_f:
                    continue                                # zero padding
                xk = xf_ref[0, :, idx, :].astype(jnp.float32)
                acc = acc + jnp.dot(w[:, k * C_in:(k + 1) * C_in], xk,
                                    preferred_element_type=jnp.float32)
        y = jnp.maximum(acc + bias, 0.0)                    # (C_out, HW)
        o_ref[0, C_slow:C_slow + C_out, t, :] = y.astype(o_ref.dtype)


def fuse_fast_to_slow(x_s, x_f, conv_weight, gamma, beta, running_mean,
                      running_var, *, fusion_kernel, alpha, eps=1e-5):
    """JAX/Pallas equivalent of FuseFastToSlow.forward([x_s, x_f])."""
    N, C_slow, T_slow, H, W = x_s.shape
    Nf, C_in, T_f, Hf, Wf = x_f.shape
    assert (N, H, W) == (Nf, Hf, Wf)
    C_out = conv_weight.shape[0]
    K = fusion_kernel
    pad = K // 2
    T_out = (T_f + 2 * pad - K) // alpha + 1
    assert T_out == T_slow, "channel concat requires matching time lengths"
    HW = H * W
    C_total = C_slow + C_out

    # Free reshapes only (no relayout): (N, C, T, H, W) -> (N, C, T, H*W).
    xs4 = x_s.reshape(N, C_slow, T_slow, HW)
    xf4 = x_f.reshape(N, C_in, T_f, HW)

    # Fold eval-mode BatchNorm into the conv weight (scale) + a bias.
    inv_std = jax.lax.rsqrt(running_var.astype(jnp.float32) + eps)
    scale = gamma.astype(jnp.float32) * inv_std                     # (C_out,)
    # (C_out, C_in, K) -> (C_out, K, C_in) -> (C_out, K*C_in): column index
    # k*C_in + c, matching the kernel's tap-concatenation order.
    w = jnp.transpose(conv_weight[:, :, :, 0, 0], (0, 2, 1))
    w = (w.astype(jnp.float32) * scale[:, None, None]).reshape(C_out, K * C_in)
    bias = (beta.astype(jnp.float32)
            - running_mean.astype(jnp.float32) * scale).reshape(C_out, 1)

    # Merge the K taps into one matmul per frame when the gathered operand is
    # cheap to build (C_in a sublane multiple) and small enough for VMEM.
    merge_taps = (C_in % 8 == 0) and (K * C_in * HW * 4 <= 4 * 1024 * 1024)

    kernel = functools.partial(_fuse_kernel, K=K, alpha=alpha, pad=pad,
                               T_f=T_f, C_slow=C_slow, merge_taps=merge_taps)

    out = pl.pallas_call(
        kernel,
        out_shape=jax.ShapeDtypeStruct((N, C_total, T_out, HW), x_s.dtype),
        grid_spec=pltpu.PrefetchScalarGridSpec(
            num_scalar_prefetch=0,
            grid=(N,),
            in_specs=[
                pl.BlockSpec((1, C_slow, T_slow, HW), lambda n: (n, 0, 0, 0)),
                pl.BlockSpec((1, C_in, T_f, HW), lambda n: (n, 0, 0, 0)),
                pl.BlockSpec((C_out, K * C_in), lambda n: (0, 0)),
                pl.BlockSpec((C_out, 1), lambda n: (0, 0)),
            ],
            out_specs=pl.BlockSpec((1, C_total, T_out, HW),
                                   lambda n: (n, 0, 0, 0)),
        ),
        compiler_params=pltpu.CompilerParams(
            dimension_semantics=("parallel",),
            vmem_limit_bytes=64 * 1024 * 1024,
        ),
    )(xs4, xf4, w, bias)

    x_s_fuse = out.reshape(N, C_total, T_out, H, W)
    return [x_s_fuse, x_f]


def _reference(x_s, x_f, conv_weight, gamma, beta, running_mean, running_var,
               *, fusion_kernel, alpha, eps=1e-5):
    """Pure-JAX reference of the same forward pass (for verification)."""
    N, C_in, T_f, H, W = x_f.shape
    C_out = conv_weight.shape[0]
    K = fusion_kernel
    pad = K // 2
    T_out = (T_f + 2 * pad - K) // alpha + 1

    xp = jnp.pad(x_f, ((0, 0), (0, 0), (pad, pad), (0, 0), (0, 0)))
    w = conv_weight[:, :, :, 0, 0]  # (C_out, C_in, K)
    outs = []
    for t in range(T_out):
        acc = jnp.zeros((N, C_out, H, W), jnp.float32)
        for k in range(K):
            acc += jnp.einsum("nchw,oc->nohw",
                              xp[:, :, t * alpha + k].astype(jnp.float32),
                              w[:, :, k].astype(jnp.float32),
                              precision=jax.lax.Precision.HIGHEST)
        outs.append(acc)
    fuse = jnp.stack(outs, axis=2)  # (N, C_out, T_out, H, W)
    inv_std = 1.0 / jnp.sqrt(running_var.astype(jnp.float32) + eps)
    scale = (gamma * inv_std).reshape(1, C_out, 1, 1, 1)
    shift = (beta - running_mean * gamma * inv_std).reshape(1, C_out, 1, 1, 1)
    fuse = jnp.maximum(fuse * scale + shift, 0.0).astype(x_f.dtype)
    return [jnp.concatenate([x_s, fuse], axis=1), x_f]


if __name__ == "__main__":
    # Module hyper-parameters (small but SlowFast-shaped).
    dim_in = 8                       # Fast pathway channels
    fusion_conv_channel_ratio = 2    # C_out = dim_in * ratio = 16
    fusion_kernel = 7
    alpha = 4                        # Fast/Slow frame-rate ratio

    N, H, W = 2, 16, 16
    T_fast = 8
    T_slow = T_fast // alpha         # = 2, matches conv output time length
    C_slow = 32
    C_out = dim_in * fusion_conv_channel_ratio

    key = jax.random.PRNGKey(0)
    k1, k2, k3, k4, k5, k6, k7 = jax.random.split(key, 7)

    x_s = jax.random.normal(k1, (N, C_slow, T_slow, H, W), jnp.float32)
    x_f = jax.random.normal(k2, (N, dim_in, T_fast, H, W), jnp.float32)

    # Conv3d weight: (C_out, C_in, K, 1, 1), no bias.
    conv_weight = 0.1 * jax.random.normal(
        k3, (C_out, dim_in, fusion_kernel, 1, 1), jnp.float32)
    # BatchNorm3d parameters / running stats (deterministic, synthetic).
    gamma = 1.0 + 0.1 * jax.random.normal(k4, (C_out,), jnp.float32)
    beta = 0.1 * jax.random.normal(k5, (C_out,), jnp.float32)
    running_mean = 0.1 * jax.random.normal(k6, (C_out,), jnp.float32)
    running_var = 0.5 + jnp.abs(jax.random.normal(k7, (C_out,), jnp.float32))

    fn = functools.partial(fuse_fast_to_slow,
                           fusion_kernel=fusion_kernel, alpha=alpha)
    out_s, out_f = fn(x_s, x_f, conv_weight, gamma, beta,
                      running_mean, running_var)
    jax.block_until_ready(out_s)
    jax.block_until_ready(out_f)

    ref_s, ref_f = _reference(x_s, x_f, conv_weight, gamma, beta,
                              running_mean, running_var,
                              fusion_kernel=fusion_kernel, alpha=alpha)

    assert out_s.shape == (N, C_slow + C_out, T_slow, H, W), out_s.shape
    assert out_f.shape == x_f.shape
    assert jnp.allclose(out_s, ref_s, atol=1e-4, rtol=1e-4)
    assert jnp.allclose(out_f, ref_f)

    print("KERNEL_OK")
</pallas_src>

<mosaic_0001>
module attributes {stable_mosaic.version = 11 : i64} {
  func.func @_fuse_kernel(%arg0: i32, %arg1: memref<1x32x2x256xf32, #tpu.memory_space<vmem>>, %arg2: memref<1x8x8x256xf32, #tpu.memory_space<vmem>>, %arg3: memref<16x56xf32, #tpu.memory_space<vmem>>, %arg4: memref<16x1xf32, #tpu.memory_space<vmem>>, %arg5: memref<1x48x2x256xf32, #tpu.memory_space<vmem>>) attributes {dimension_semantics = [#tpu.dimension_semantics<parallel>], iteration_bounds = array<i64: 2>, scalar_prefetch = 0 : i64, scratch_operands = 0 : i64, tpu.core_type = #tpu.core_type<tc>, window_params = [{transform_indices = @transform_0, window_bounds = array<i64: 1, 32, 2, 256>}, {transform_indices = @transform_1, window_bounds = array<i64: 1, 8, 8, 256>}, {pipeline_mode = #tpu.pipeline_mode<synchronous>, transform_indices = @transform_2, window_bounds = array<i64: 16, 56>}, {pipeline_mode = #tpu.pipeline_mode<synchronous>, transform_indices = @transform_3, window_bounds = array<i64: 16, 1>}, {transform_indices = @transform_4, window_bounds = array<i64: 1, 48, 2, 256>}]} {
    %c0 = arith.constant 0 : index
    %c0_0 = arith.constant 0 : index
    %c0_1 = arith.constant 0 : index
    %c0_2 = arith.constant 0 : index
    %0 = vector.load %arg1[%c0, %c0_0, %c0_1, %c0_2] : memref<1x32x2x256xf32, #tpu.memory_space<vmem>>, vector<1x32x2x256xf32>
    %1 = vector.shape_cast %0 : vector<1x32x2x256xf32> to vector<32x2x256xf32>
    %c0_3 = arith.constant 0 : index
    %c0_4 = arith.constant 0 : index
    %c0_5 = arith.constant 0 : index
    %c0_6 = arith.constant 0 : index
    %2 = vector.load %arg5[%c0_3, %c0_4, %c0_5, %c0_6] : memref<1x48x2x256xf32, #tpu.memory_space<vmem>>, vector<1x32x2x256xf32>
    %3 = vector.shape_cast %2 : vector<1x32x2x256xf32> to vector<32x2x256xf32>
    %4 = vector.shape_cast %1 : vector<32x2x256xf32> to vector<1x32x2x256xf32>
    tpu.vector_store %arg5[%c0_3, %c0_4, %c0_5, %c0_6], %4 {strides = array<i32>} : memref<1x48x2x256xf32, #tpu.memory_space<vmem>>, vector<1x32x2x256xf32>,
    %c0_7 = arith.constant 0 : index
    %c0_8 = arith.constant 0 : index
    %5 = vector.load %arg3[%c0_7, %c0_8] : memref<16x56xf32, #tpu.memory_space<vmem>>, vector<16x56xf32>
    %c0_9 = arith.constant 0 : index
    %c0_10 = arith.constant 0 : index
    %6 = vector.load %arg4[%c0_9, %c0_10] : memref<16x1xf32, #tpu.memory_space<vmem>>, vector<16x1xf32>
    %7 = vector.shape_cast %6 : vector<16x1xf32> to vector<16x1xf32>
    %8 = vector.broadcast %7 : vector<16x1xf32> to vector<16x256xf32>
    %cst = arith.constant 0.000000e+00 : f32
    %9 = vector.broadcast %cst : f32 to vector<8x256xf32>
    %c0_11 = arith.constant 0 : index
    %c0_12 = arith.constant 0 : index
    %c0_13 = arith.constant 0 : index
    %c0_14 = arith.constant 0 : index
    %10 = vector.load %arg2[%c0_11, %c0_12, %c0_13, %c0_14] : memref<1x8x8x256xf32, #tpu.memory_space<vmem>>, vector<1x8x1x256xf32>
    %11 = vector.shape_cast %10 : vector<1x8x1x256xf32> to vector<8x256xf32>
    %c0_15 = arith.constant 0 : index
    %c0_16 = arith.constant 0 : index
    %c1 = arith.constant 1 : index
    %c0_17 = arith.constant 0 : index
    %12 = vector.load %arg2[%c0_15, %c0_16, %c1, %c0_17] : memref<1x8x8x256xf32, #tpu.memory_space<vmem>>, vector<1x8x1x256xf32>
    %13 = vector.shape_cast %12 : vector<1x8x1x256xf32> to vector<8x256xf32>
    %c0_18 = arith.constant 0 : index
    %c0_19 = arith.constant 0 : index
    %c2 = arith.constant 2 : index
    %c0_20 = arith.constant 0 : index
    %14 = vector.load %arg2[%c0_18, %c0_19, %c2, %c0_20] : memref<1x8x8x256xf32, #tpu.memory_space<vmem>>, vector<1x8x1x256xf32>
    %15 = vector.shape_cast %14 : vector<1x8x1x256xf32> to vector<8x256xf32>
    %c0_21 = arith.constant 0 : index
    %c0_22 = arith.constant 0 : index
    %c3 = arith.constant 3 : index
    %c0_23 = arith.constant 0 : index
    %16 = vector.load %arg2[%c0_21, %c0_22, %c3, %c0_23] : memref<1x8x8x256xf32, #tpu.memory_space<vmem>>, vector<1x8x1x256xf32>
    %17 = vector.shape_cast %16 : vector<1x8x1x256xf32> to vector<8x256xf32>
    %18 = tpu.concatenate %9, %9, %9, %11, %13, %15, %17 in 0 : vector<8x256xf32>, vector<8x256xf32>, vector<8x256xf32>, vector<8x256xf32>, vector<8x256xf32>, vector<8x256xf32>, vector<8x256xf32> -> vector<56x256xf32>
    %cst_24 = arith.constant dense<0.000000e+00> : vector<16x256xf32>
    %19 = tpu.matmul %5, %18, %cst_24 {dimension_numbers = #tpu.dot_dimension_numbers<[1], [0], [0], [1], [0, 0, 1, 1], [], []>} : vector<16x56xf32>, vector<56x256xf32>, vector<16x256xf32> -> vector<16x256xf32>
    %20 = arith.addf %19, %8 : vector<16x256xf32>
    %cst_25 = arith.constant 0.000000e+00 : f32
    %21 = vector.broadcast %cst_25 : f32 to vector<16x256xf32>
    %22 = arith.maximumf %20, %21 : vector<16x256xf32>
    %c0_26 = arith.constant 0 : index
    %c32 = arith.constant 32 : index
    %c0_27 = arith.constant 0 : index
    %c0_28 = arith.constant 0 : index
    %23 = vector.load %arg5[%c0_26, %c32, %c0_27, %c0_28] : memref<1x48x2x256xf32, #tpu.memory_space<vmem>>, vector<1x16x1x256xf32>
    %24 = vector.shape_cast %23 : vector<1x16x1x256xf32> to vector<16x256xf32>
    %25 = vector.shape_cast %22 : vector<16x256xf32> to vector<1x16x1x256xf32>
    tpu.vector_store %arg5[%c0_26, %c32, %c0_27, %c0_28], %25 {strides = array<i32>} : memref<1x48x2x256xf32, #tpu.memory_space<vmem>>, vector<1x16x1x256xf32>,
    %c0_29 = arith.constant 0 : index
    %c0_30 = arith.constant 0 : index
    %c1_31 = arith.constant 1 : index
    %c0_32 = arith.constant 0 : index
    %26 = vector.load %arg2[%c0_29, %c0_30, %c1_31, %c0_32] : memref<1x8x8x256xf32, #tpu.memory_space<vmem>>, vector<1x8x1x256xf32>
    %27 = vector.shape_cast %26 : vector<1x8x1x256xf32> to vector<8x256xf32>
    %c0_33 = arith.constant 0 : index
    %c0_34 = arith.constant 0 : index
    %c2_35 = arith.constant 2 : index
    %c0_36 = arith.constant 0 : index
    %28 = vector.load %arg2[%c0_33, %c0_34, %c2_35, %c0_36] : memref<1x8x8x256xf32, #tpu.memory_space<vmem>>, vector<1x8x1x256xf32>
    %29 = vector.shape_cast %28 : vector<1x8x1x256xf32> to vector<8x256xf32>
    %c0_37 = arith.constant 0 : index
    %c0_38 = arith.constant 0 : index
    %c3_39 = arith.constant 3 : index
    %c0_40 = arith.constant 0 : index
    %30 = vector.load %arg2[%c0_37, %c0_38, %c3_39, %c0_40] : memref<1x8x8x256xf32, #tpu.memory_space<vmem>>, vector<1x8x1x256xf32>
    %31 = vector.shape_cast %30 : vector<1x8x1x256xf32> to vector<8x256xf32>
    %c0_41 = arith.constant 0 : index
    %c0_42 = arith.constant 0 : index
    %c4 = arith.constant 4 : index
    %c0_43 = arith.constant 0 : index
    %32 = vector.load %arg2[%c0_41, %c0_42, %c4, %c0_43] : memref<1x8x8x256xf32, #tpu.memory_space<vmem>>, vector<1x8x1x256xf32>
    %33 = vector.shape_cast %32 : vector<1x8x1x256xf32> to vector<8x256xf32>
    %c0_44 = arith.constant 0 : index
    %c0_45 = arith.constant 0 : index
    %c5 = arith.constant 5 : index
    %c0_46 = arith.constant 0 : index
    %34 = vector.load %arg2[%c0_44, %c0_45, %c5, %c0_46] : memref<1x8x8x256xf32, #tpu.memory_space<vmem>>, vector<1x8x1x256xf32>
    %35 = vector.shape_cast %34 : vector<1x8x1x256xf32> to vector<8x256xf32>
    %c0_47 = arith.constant 0 : index
    %c0_48 = arith.constant 0 : index
    %c6 = arith.constant 6 : index
    %c0_49 = arith.constant 0 : index
    %36 = vector.load %arg2[%c0_47, %c0_48, %c6, %c0_49] : memref<1x8x8x256xf32, #tpu.memory_space<vmem>>, vector<1x8x1x256xf32>
    %37 = vector.shape_cast %36 : vector<1x8x1x256xf32> to vector<8x256xf32>
    %c0_50 = arith.constant 0 : index
    %c0_51 = arith.constant 0 : index
    %c7 = arith.constant 7 : index
    %c0_52 = arith.constant 0 : index
    %38 = vector.load %arg2[%c0_50, %c0_51, %c7, %c0_52] : memref<1x8x8x256xf32, #tpu.memory_space<vmem>>, vector<1x8x1x256xf32>
    %39 = vector.shape_cast %38 : vector<1x8x1x256xf32> to vector<8x256xf32>
    %40 = tpu.concatenate %27, %29, %31, %33, %35, %37, %39 in 0 : vector<8x256xf32>, vector<8x256xf32>, vector<8x256xf32>, vector<8x256xf32>, vector<8x256xf32>, vector<8x256xf32>, vector<8x256xf32> -> vector<56x256xf32>
    %cst_53 = arith.constant dense<0.000000e+00> : vector<16x256xf32>
    %41 = tpu.matmul %5, %40, %cst_53 {dimension_numbers = #tpu.dot_dimension_numbers<[1], [0], [0], [1], [0, 0, 1, 1], [], []>} : vector<16x56xf32>, vector<56x256xf32>, vector<16x256xf32> -> vector<16x256xf32>
    %42 = arith.addf %41, %8 : vector<16x256xf32>
    %cst_54 = arith.constant 0.000000e+00 : f32
    %43 = vector.broadcast %cst_54 : f32 to vector<16x256xf32>
    %44 = arith.maximumf %42, %43 : vector<16x256xf32>
    %c0_55 = arith.constant 0 : index
    %c32_56 = arith.constant 32 : index
    %c1_57 = arith.constant 1 : index
    %c0_58 = arith.constant 0 : index
    %45 = vector.load %arg5[%c0_55, %c32_56, %c1_57, %c0_58] : memref<1x48x2x256xf32, #tpu.memory_space<vmem>>, vector<1x16x1x256xf32>
    %46 = vector.shape_cast %45 : vector<1x16x1x256xf32> to vector<16x256xf32>
    %47 = vector.shape_cast %44 : vector<16x256xf32> to vector<1x16x1x256xf32>
    tpu.vector_store %arg5[%c0_55, %c32_56, %c1_57, %c0_58], %47 {strides = array<i32>} : memref<1x48x2x256xf32, #tpu.memory_space<vmem>>, vector<1x16x1x256xf32>,
    return
  }
  func.func @transform_0(%arg0: i32) -> (i32, i32, i32, i32) {
    %c0_i32 = arith.constant 0 : i32
    %c0_i32_0 = arith.constant 0 : i32
    %c0_i32_1 = arith.constant 0 : i32
    %c0_i32_2 = arith.constant 0 : i32
    return %arg0, %c0_i32, %c0_i32_0, %c0_i32_1 : i32, i32, i32, i32
  }
  func.func @transform_1(%arg0: i32) -> (i32, i32, i32, i32) {
    %c0_i32 = arith.constant 0 : i32
    %c0_i32_0 = arith.constant 0 : i32
    %c0_i32_1 = arith.constant 0 : i32
    %c0_i32_2 = arith.constant 0 : i32
    return %arg0, %c0_i32, %c0_i32_0, %c0_i32_1 : i32, i32, i32, i32
  }
  func.func @transform_2(%arg0: i32) -> (i32, i32) {
    %c0_i32 = arith.constant 0 : i32
    %c0_i32_0 = arith.constant 0 : i32
    %c0_i32_1 = arith.constant 0 : i32
    return %c0_i32, %c0_i32_0 : i32, i32
  }
  func.func @transform_3(%arg0: i32) -> (i32, i32) {
    %c0_i32 = arith.constant 0 : i32
    %c0_i32_0 = arith.constant 0 : i32
    %c0_i32_1 = arith.constant 0 : i32
    return %c0_i32, %c0_i32_0 : i32, i32
  }
  func.func @transform_4(%arg0: i32) -> (i32, i32, i32, i32) {
    %c0_i32 = arith.constant 0 : i32
    %c0_i32_0 = arith.constant 0 : i32
    %c0_i32_1 = arith.constant 0 : i32
    %c0_i32_2 = arith.constant 0 : i32
    return %arg0, %c0_i32, %c0_i32_0, %c0_i32_1 : i32, i32, i32, i32
  }
}

</mosaic_0001>

<bundles_post_ra>
// kernel: tpu_custom_call.1
= control target key start
LH: loop header
LB: loop body
LE: loop exit
PB: predicated region body
PF: predicated region fallthrough
CT: control target
= control target key end

     0   :  { %s2077_s0 = inlined_call_operand.hbm [shape: f32[2,32,2,256], index: 0, kind: input, shape index: {}]   ;;  %s2078_s1 = inlined_call_operand.hbm [shape: f32[2,8,8,256], index: 1, kind: input, shape index: {}]   ;;  %s2079_s2 = inlined_call_operand.vmem [shape: f32[16,56], index: 2, kind: input, shape index: {}]   ;;  %s2080_s3 = inlined_call_operand.vmem [shape: f32[16,1], index: 3, kind: input, shape index: {}]   ;;  %s2081_s4 = inlined_call_operand.hbm [shape: f32[2,48,2,256], index: 4, kind: output, shape index: {}]  }
   0x1   :  { %2082 = sst [smem:[#allocation12_spill]] %s2077_s0 }
   0x2   :  { %9 = vsyncpa [#allocation3], 0 }
   0x3   :  { %11 = vsyncpa [#allocation3 + $0x1], 0 }
   0x4   :  { %12 = vsyncpa [#allocation6], 0 }
   0x5   :  { %14 = vsyncpa [#allocation6 + $0x1], 0 }
   0x6   :  { %15 = vsyncpa [#allocation4], 0 }
   0x7   :  { %17 = vsyncpa [#allocation4 + $0x1], 0  ;;  %s1587_s15 = smov 0   ;;  %s1589_s16 = smov 0  }
   0x8   :  { %s1591_s17 = smov 0   ;;  %s1593_s18 = smov 0  }
   0x9 LB: > { %s1608_s19 = sadd.s32 4294967295, %s1552_s18   ;;  %s1216_s20 = sadd.s32 4294967294, %s1552_s18   ;;  %s1552_s18 = sphi %s1593_s18, %s2098_s18   ;;  %s1548_s17 = sphi %s1591_s17, %s2097_s17   ;;  %s1544_s16 = sphi %s1589_s16, %s2096_s16   ;;  %s1540_s15 = sphi %s1587_s15, %s2095_s15  }
   0xa   : > { %s1612_s21 = sadd.s32 1, %s1552_s18   ;;  %s30_s22 = sadd.s32 1, %s1548_s17 }
   0xb   : > { %s27_s23 = ssub.s32 %s1552_s18, %s1612_s21  ;;  %p37_p0 = scmp.ne.s32.totalorder %s1548_s17, %s1544_s16 }
   0xc   : > { %p28_p1 = scmp.eq.s32.totalorder %s27_s23, 0  ;;  %p38_p2 = scmp.eq.s32.totalorder %s1552_s18, 0 }
   0xd   : > { %p43_p3 = scmp.ne.s32.totalorder %s1544_s16, %s1540_s15  ;;  %p44_p4 = scmp.eq.s32.totalorder %s1608_s19, 0 }
   0xe   : > { %s1624_s24 = scalar_select %p28_p1, %s1548_s17, %s30_s22  }
   0xf   : > { %p1626_p5 = por %p38_p2, %p37_p0  ;;  %p1630_p6 = por %p44_p4, %p43_p3 }
  0x10   : > { %2083 = sst [smem:[#allocation11_spill]] %s1624_s24  ;;  %p135_p7 = scmp.eq.s32.totalorder %s1608_s19, 1 }
  0x11   : > { %p141_p8 = scmp.eq.s32.totalorder %s1216_s20, 1  ;;  %p1379_p10 = scmp.lt.s32.totalorder %s1552_s18, 2 }
  0x12   : > { %p1637_p11 = por %p135_p7, %p37_p0  ;;  %s1646_s29 = sand.u32 1, %s1548_s17  }
  0x13   : > { %p1641_p12 = por %p141_p8, %p43_p3  ;;  %s1358_s30 = sshll.u32 %s1552_s18, 7 }
  0x14   : > { %s1219_s5 = sshll.u32 %s1646_s29, 7  ;;  %s2088_s0 = sld [smem:[#allocation12_spill]] }
  0x15   : > { %s171_s10 = scalar_lea.vmem [#allocation2], %s1219_s5  ;;  %p1659_p13 = pnand %p1379_p10, %p1626_p5 }
  0x16   : > { %s179_s11 = sshll.u32 %s171_s10, 4  ;;  %p1225_p0 = scmp.ge.s32.totalorder %s1552_s18, 1  ;;  %s180_s11 = int_to_ptr.vmem [resolvable:$true] %s179_s11 }
  0x17   : > { %p209_p1 = scmp.lt.s32.totalorder %s1552_s18, 3  ;;  %s168_s13 = scalar_lea.sflag [#allocation3], %s1646_s29 }
  0x18   : > { %p1426_p3 = pneg %p1659_p13 }
  0x1a   : > { %s176_s8 = scalar_lea.hbm %s2088_s0, %s1358_s30  ;;  %s1429_s25 = scalar_lea.hbm %s2088_s0, 256 }
  0x1b   : > { %s177_s9 = sshll.u32 %s176_s8, 4  ;;  %s178_s9 = int_to_ptr.hbm [resolvable:$true] %s177_s9 }
  0x1c   : > { %s1422_s14 = sshra.s32 %s178_s9, 4  ;;  %s1423_s14 = int_to_ptr.hbm [resolvable:$true] %s1422_s14 }
  0x1d   : > { %s1424_s20 = scalar_lea.hbm %s1423_s14, 128  ;;  %p1430_p5 = scmp.lt.s32.totalorder %s1423_s14, %s2088_s0 }
  0x1e   : > { %p1425_p2 = scmp.ne.s32.totalorder %s1423_s14, %s1424_s20  ;;  %p1431_p8 = scmp.lt.s32.totalorder %s1429_s25, %s1424_s20 }
  0x20   : > { %p1427_p4 = pnand %p1426_p3, %p1425_p2  ;;  %p1432_p10 = por %p1431_p8, %p1430_p5 }
  0x22   : > { %p1428_p7 = pneg %p1427_p4 }
  0x24   : > { %p1433_p9 = pnand %p1432_p10, %p1428_p7 }
  0x26   : > { %1436 = shalt.err (!%p1433_p9)
}
  0x27   : > { %s1554_s8 = smov 64   ;;  %s1555_s10 = smov 4  }
  0x28   : > { %1371 = dma.hbm_to_vmem [thread:$0]  (!%p1659_p13), %s178_s9, 2048, %s180_s11, %s168_s13, %s1554_s8, %s1554_s8, %s1555_s10  }
  0x29   : > { %p1683_p2 = pnand %p1225_p0, %p209_p1  ;;  %s198_s23 = scalar_lea.hbm %s2078_s1, %s1358_s30 }
  0x2a   : > { %s199_s25 = sshll.u32 %s198_s23, 4  ;;  %s193_s6 = scalar_lea.vmem [#allocation5], %s1219_s5  ;;  %s200_s25 = int_to_ptr.hbm [resolvable:$true] %s199_s25 }
  0x2b   : > { %s201_s7 = sshll.u32 %s193_s6, 4  ;;  %s190_s0 = scalar_lea.sflag [#allocation6], %s1646_s29  ;;  %s202_s7 = int_to_ptr.vmem [resolvable:$true] %s201_s7 }
  0x2c   : > { %s1452_s24 = sshra.s32 %s200_s25, 4  ;;  %s1459_s8 = scalar_lea.hbm %s2078_s1, 256  ;;  %s1453_s24 = int_to_ptr.hbm [resolvable:$true] %s1452_s24 }
  0x2d   : > { %s1454_s9 = scalar_lea.hbm %s1453_s24, 128  ;;  %p1460_p4 = scmp.lt.s32.totalorder %s1453_s24, %s2078_s1 }
  0x2e   : > { %p1455_p9 = scmp.ne.s32.totalorder %s1453_s24, %s1454_s9  ;;  %p1461_p7 = scmp.lt.s32.totalorder %s1459_s8, %s1454_s9 }
  0x30   : > { %p1457_p0 = pnand %p1455_p9, %p1426_p3  ;;  %p1462_p5 = por %p1461_p7, %p1460_p4 }
  0x32   : > { %p1458_p1 = pneg %p1457_p0 }
  0x34   : > { %p1463_p8 = pnand %p1462_p5, %p1458_p1 }
  0x36   : > { %1466 = shalt.err (!%p1463_p8)
}
  0x37   : > { %s1556_s29 = smov 256   ;;  %s1557_s5 = smov 16  }
  0x38   : > { %1374 = dma.hbm_to_vmem [thread:$0]  (!%p1659_p13), %s200_s25, 2048, %s202_s7, %s190_s0, %s1556_s29, %s1556_s29, %s1557_s5  }
  0x39   : > { %213 = sbr.rel (%p1683_p2) target bundleno = 405 (0x195), region = 36  ;;  %s1709_s14 = sand.u32 (!%p1683_p2), 1, %s1544_s16  }
  0x3a   : > { %s1226_s20 = sshll.u32 (!%p1683_p2), %s1709_s14, 7  ;;  %s216_s24 = scalar_lea.sflag (!%p1683_p2), [#allocation3], %s1709_s14 }
  0x3b   : > { %s1713_s23 = scalar_lea.vmem (!%p1683_p2), [#allocation2], %s1226_s20 }
  0x3e   : > { %1527 = dma.done.wait (%p1630_p6), %s216_s24, 2048  }
  0x3f   : > { %1529 = vsyncadd (%p1630_p6), %s216_s24, 4294965248  ;;  %s226_s0 = scalar_lea.sflag [#allocation6], %s1709_s14  ;;  %s1720_s12 = scalar_lea.vmem [#allocation5], %s1226_s20 }
  0x40   : > { %1531 = dma.done.wait (%p1630_p6), %s226_s0, 2048  }
  0x41   : > { %1533 = vsyncadd (%p1630_p6), %s226_s0, 4294965248  ;;  %v338_v0 = vld [vmem:[%s1720_s12] ss:$8 sm:$0x3]  ;;  %vm509_vm0 = vcmask 457728   ;;  %s1360_s8 = smul.u32 192, %s1709_s14 }
  0x42   : > { %v1228_v1 = vld [vmem:[%s1720_s12 + $0x10] ss:$8 sm:$0x3]  ;;  %v1229_v2 = vld [vmem:[%s1720_s12 + $0x20] ss:$8 sm:$0x3] }
  0x43   : > { %v1230_v3 = vld [vmem:[%s1720_s12 + $0x30] ss:$8 sm:$0x3]  ;;  %409 = vst [vmem:[#allocation1] ss:$9 sm:$0xff] %v338_v0  ;;  %vm572_vm1 = vcmask 1040384  }
  0x44   : > { %v1231_v4 = vld [vmem:[%s1720_s12 + $0x40] ss:$8 sm:$0x3]  ;;  %411 = vst [vmem:[#allocation1 + $0x1] ss:$9 sm:$0xff] %v1228_v1  ;;  %vm574_vm2 = vcmask 1041409  }
  0x45   : > { %v1232_v5 = vld [vmem:[%s1720_s12 + $0x50] ss:$8 sm:$0x3]  ;;  %413 = vst [vmem:[#allocation1 + $0x2] ss:$9 sm:$0xff] %v1229_v2  ;;  %vm577_vm3 = vcmask 1042434  }
  0x46   : > { %v1233_v6 = vld [vmem:[%s1720_s12 + $0x60] ss:$8 sm:$0x3]  ;;  %415 = vst [vmem:[#allocation1 + $0x3] ss:$9 sm:$0xff] %v1230_v3  ;;  %vm580_vm4 = vcmask 1043459  }
  0x47   : > { %v1234_v7 = vld [vmem:[%s1720_s12 + $0x70] ss:$8 sm:$0x3]  ;;  %417 = vst [vmem:[#allocation1 + $0x4] ss:$9 sm:$0xff] %v1231_v4  ;;  %vm583_vm5 = vcmask 1044484  }
  0x48   : > { %419 = vst [vmem:[#allocation1 + $0x5] ss:$9 sm:$0xff] %v1232_v5  ;;  %v1235_v8 = vld [vmem:[%s1720_s12 + $0x1] ss:$8 sm:$0x3]  ;;  %vm586_vm7 = vcmask 1045509  }
  0x49   : > { %421 = vst [vmem:[#allocation1 + $0x6] ss:$9 sm:$0xff] %v1233_v6  ;;  %v1236_v9 = vld [vmem:[%s1720_s12 + $0x11] ss:$8 sm:$0x3]  ;;  %vm589_vm8 = vcmask 1046534  }
  0x4a   : > { %423 = vst [vmem:[#allocation1 + $0x7] ss:$9 sm:$0xff] %v1234_v7  ;;  %v1237_v10 = vld [vmem:[%s1720_s12 + $0x21] ss:$8 sm:$0x3]  ;;  %vm592_vm9 = vcmask 1046528  }
  0x4b   : > { %v1238_v13 = vld [vmem:[%s1720_s12 + $0x31] ss:$8 sm:$0x3]  ;;  %v1239_v14 = vld [vmem:[%s1720_s12 + $0x41] ss:$8 sm:$0x3] }
  0x4c   : > { %v1240_v15 = vld [vmem:[%s1720_s12 + $0x51] ss:$8 sm:$0x3]  ;;  %v1241_v16 = vld [vmem:[%s1720_s12 + $0x61] ss:$8 sm:$0x3] }
  0x4d   : > { %v1242_v17 = vld [vmem:[%s1720_s12 + $0x71] ss:$8 sm:$0x3]  ;;  %v1243_v18 = vld [vmem:[%s1720_s12 + $0x2] ss:$8 sm:$0x3] }
  0x4e   : > { %v1244_v19 = vld [vmem:[%s1720_s12 + $0x12] ss:$8 sm:$0x3]  ;;  %v1245_v20 = vld [vmem:[%s1720_s12 + $0x22] ss:$8 sm:$0x3] }
  0x4f   : > { %v1246_v23 = vld [vmem:[%s1720_s12 + $0x32] ss:$8 sm:$0x3]  ;;  %v1247_v24 = vld [vmem:[%s1720_s12 + $0x42] ss:$8 sm:$0x3] }
  0x50   : > { %v1248_v25 = vld [vmem:[%s1720_s12 + $0x52] ss:$8 sm:$0x3]  ;;  %v1249_v26 = vld [vmem:[%s1720_s12 + $0x62] ss:$8 sm:$0x3] }
  0x51   : > { %v1737_v11 = vld [vmem:[#allocation1] sm:$0xff]  ;;  %v1739_v12 = vld [vmem:[#allocation1 + $0x9] sm:$0xff]  ;;  %s1880_s30 = scalar_lea.vmem [#allocation7], %s1360_s8  ;;  %s1361_s10 = smul.u32 192, %s1608_s19 }
  0x52   : > { %436 = vst [vmem:[#allocation1] ss:$9 sm:$0xff] %v1235_v8  ;;  %v1250_v27 = vld [vmem:[%s1720_s12 + $0x72] ss:$8 sm:$0x3]  ;;  %s1086_s20 = sshll.u32 %s1880_s30, 4  ;;  %s1087_s20 = int_to_ptr.vmem [resolvable:$true] %s1086_s20 }
  0x53   : > { %438 = vst [vmem:[#allocation1 + $0x1] ss:$9 sm:$0xff] %v1236_v9  ;;  %v1251_v28 = vld [vmem:[%s1720_s12 + $0x3] ss:$8 sm:$0x3]  ;;  %s1085_s5 = scalar_lea.hbm %s2081_s4, %s1361_s10  ;;  %s1502_s25 = scalar_lea.hbm %s2081_s4, 384 }
  0x54   : > { %440 = vst [vmem:[#allocation1 + $0x2] ss:$9 sm:$0xff] %v1237_v10  ;;  %v1252_v29 = vld [vmem:[%s1720_s12 + $0x13] ss:$8 sm:$0x3]  ;;  %s1088_s24 = sshll.u32 %s1085_s5, 4  ;;  %s1089_s24 = int_to_ptr.hbm [resolvable:$true] %s1088_s24 }
  0x55   : > { %442 = vst [vmem:[#allocation1 + $0x3] ss:$9 sm:$0xff] %v1238_v13  ;;  %v1253_v30 = vld [vmem:[%s1720_s12 + $0x23] ss:$8 sm:$0x3]  ;;  %s1496_s0 = sshra.s32 %s1089_s24, 4  ;;  %s1497_s0 = int_to_ptr.hbm [resolvable:$true] %s1496_s0 }
  0x56   : > { %444 = vst [vmem:[#allocation1 + $0x4] ss:$9 sm:$0xff] %v1239_v14  ;;  %v1254_v33 = vld [vmem:[%s1720_s12 + $0x33] ss:$8 sm:$0x3]  ;;  %p1503_p10 = scmp.lt.s32.totalorder %s1497_s0, %s2081_s4 }
  0x57   : > { %446 = vst [vmem:[#allocation1 + $0x5] ss:$9 sm:$0xff] %v1240_v15  ;;  %v1255_v34 = vld [vmem:[%s1720_s12 + $0x43] ss:$8 sm:$0x3] }
  0x58   : > { %448 = vst [vmem:[#allocation1 + $0x6] ss:$9 sm:$0xff] %v1241_v16  ;;  %v1256_v35 = vld [vmem:[%s1720_s12 + $0x53] ss:$8 sm:$0x3] }
  0x59   : > { %450 = vst [vmem:[#allocation1 + $0x7] ss:$9 sm:$0xff] %v1242_v17  ;;  %v1257_v36 = vld [vmem:[%s1720_s12 + $0x63] ss:$8 sm:$0x3] }
  0x5a   : > { %v1258_v37 = vld [vmem:[%s1720_s12 + $0x73] ss:$8 sm:$0x3]  ;;  %v1279_v40 = vld [vmem:[%s1720_s12 + $0x1] ss:$8 sm:$0x3] }
  0x5b   : > { %v1280_v41 = vld [vmem:[%s1720_s12 + $0x11] ss:$8 sm:$0x3]  ;;  %v1281_v42 = vld [vmem:[%s1720_s12 + $0x21] ss:$8 sm:$0x3] }
  0x5c   : > { %v1282_v43 = vld [vmem:[%s1720_s12 + $0x31] ss:$8 sm:$0x3]  ;;  %v1283_v44 = vld [vmem:[%s1720_s12 + $0x41] ss:$8 sm:$0x3] }
  0x5d   : > { %v1284_v45 = vld [vmem:[%s1720_s12 + $0x51] ss:$8 sm:$0x3]  ;;  %v1285_v46 = vld [vmem:[%s1720_s12 + $0x61] ss:$8 sm:$0x3] }
  0x5e   : > { %v1286_v47 = vld [vmem:[%s1720_s12 + $0x71] ss:$8 sm:$0x3]  ;;  %v1287_v48 = vld [vmem:[%s1720_s12 + $0x2] ss:$8 sm:$0x3] }
  0x5f   : > { %v1288_v49 = vld [vmem:[%s1720_s12 + $0x12] ss:$8 sm:$0x3]  ;;  %v1289_v50 = vld [vmem:[%s1720_s12 + $0x22] ss:$8 sm:$0x3] }
  0x60   : > { %v451_v21 = vld [vmem:[#allocation1] sm:$0xff]  ;;  %v452_v22 = vld [vmem:[#allocation1 + $0x9] sm:$0xff] }
  0x61   : > { %463 = vst [vmem:[#allocation1] ss:$9 sm:$0xff] %v1243_v18  ;;  %v1290_v53 = vld [vmem:[%s1720_s12 + $0x32] ss:$8 sm:$0x3] }
  0x62   : > { %465 = vst [vmem:[#allocation1 + $0x1] ss:$9 sm:$0xff] %v1244_v19  ;;  %v1291_v54 = vld [vmem:[%s1720_s12 + $0x42] ss:$8 sm:$0x3] }
  0x63   : > { %467 = vst [vmem:[#allocation1 + $0x2] ss:$9 sm:$0xff] %v1245_v20  ;;  %v1292_v55 = vld [vmem:[%s1720_s12 + $0x52] ss:$8 sm:$0x3] }
  0x64   : > { %469 = vst [vmem:[#allocation1 + $0x3] ss:$9 sm:$0xff] %v1246_v23  ;;  %v1293_v56 = vld [vmem:[%s1720_s12 + $0x62] ss:$8 sm:$0x3] }
  0x65   : > { %471 = vst [vmem:[#allocation1 + $0x4] ss:$9 sm:$0xff] %v1247_v24  ;;  %v1294_v57 = vld [vmem:[%s1720_s12 + $0x72] ss:$8 sm:$0x3] }
  0x66   : > { %473 = vst [vmem:[#allocation1 + $0x5] ss:$9 sm:$0xff] %v1248_v25  ;;  %v1295_v58 = vld [vmem:[%s1720_s12 + $0x3] ss:$8 sm:$0x3] }
  0x67   : > { %475 = vst [vmem:[#allocation1 + $0x6] ss:$9 sm:$0xff] %v1249_v26  ;;  %v1296_v59 = vld [vmem:[%s1720_s12 + $0x13] ss:$8 sm:$0x3] }
  0x68   : > { %477 = vst [vmem:[#allocation1 + $0x7] ss:$9 sm:$0xff] %v1250_v27  ;;  %v1297_v60 = vld [vmem:[%s1720_s12 + $0x23] ss:$8 sm:$0x3] }
  0x69   : > { %v1298_v63 = vld [vmem:[%s1720_s12 + $0x33] ss:$8 sm:$0x3]  ;;  %v1299_v0 = vld [vmem:[%s1720_s12 + $0x43] ss:$8 sm:$0x3] }
  0x6a   : > { %v1300_v1 = vld [vmem:[%s1720_s12 + $0x53] ss:$8 sm:$0x3]  ;;  %v1301_v2 = vld [vmem:[%s1720_s12 + $0x63] ss:$8 sm:$0x3] }
  0x6b   : > { %v1302_v3 = vld [vmem:[%s1720_s12 + $0x73] ss:$8 sm:$0x3]  ;;  %v1303_v4 = vld [vmem:[%s1720_s12 + $0x4] ss:$8 sm:$0x3] }
  0x6c   : > { %v1304_v5 = vld [vmem:[%s1720_s12 + $0x14] ss:$8 sm:$0x3]  ;;  %v1305_v6 = vld [vmem:[%s1720_s12 + $0x24] ss:$8 sm:$0x3] }
  0x6d   : > { %v1306_v9 = vld [vmem:[%s1720_s12 + $0x34] ss:$8 sm:$0x3]  ;;  %v1307_v10 = vld [vmem:[%s1720_s12 + $0x44] ss:$8 sm:$0x3] }
  0x6e   : > { %v1310_v13 = vld [vmem:[%s1720_s12 + $0x74] ss:$8 sm:$0x3]  ;;  %v1311_v14 = vld [vmem:[%s1720_s12 + $0x5] ss:$8 sm:$0x3] }
  0x6f   : > { %v478_v31 = vld [vmem:[#allocation1] sm:$0xff]  ;;  %v479_v32 = vld [vmem:[#allocation1 + $0x9] sm:$0xff] }
  0x70   : > { %490 = vst [vmem:[#allocation1] ss:$9 sm:$0xff] %v1251_v28  ;;  %v1312_v15 = vld [vmem:[%s1720_s12 + $0x15] ss:$8 sm:$0x3] }
  0x71   : > { %492 = vst [vmem:[#allocation1 + $0x1] ss:$9 sm:$0xff] %v1252_v29  ;;  %v1313_v16 = vld [vmem:[%s1720_s12 + $0x25] ss:$8 sm:$0x3] }
  0x72   : > { %494 = vst [vmem:[#allocation1 + $0x2] ss:$9 sm:$0xff] %v1253_v30  ;;  %v1314_v19 = vld [vmem:[%s1720_s12 + $0x35] ss:$8 sm:$0x3] }
  0x73   : > { %496 = vst [vmem:[#allocation1 + $0x3] ss:$9 sm:$0xff] %v1254_v33  ;;  %v1315_v20 = vld [vmem:[%s1720_s12 + $0x45] ss:$8 sm:$0x3] }
  0x74   : > { %498 = vst [vmem:[#allocation1 + $0x4] ss:$9 sm:$0xff] %v1255_v34  ;;  %v1318_v23 = vld [vmem:[%s1720_s12 + $0x75] ss:$8 sm:$0x3] }
  0x75   : > { %500 = vst [vmem:[#allocation1 + $0x5] ss:$9 sm:$0xff] %v1256_v35  ;;  %v1319_v24 = vld [vmem:[%s1720_s12 + $0x6] ss:$8 sm:$0x3]  ;;  %v324_v35 = vld [vmem:[%s2079_s2] sm:$0xff] }
  0x76   : > { %502 = vst [vmem:[#allocation1 + $0x6] ss:$9 sm:$0xff] %v1257_v36  ;;  %v1320_v25 = vld [vmem:[%s1720_s12 + $0x16] ss:$8 sm:$0x3] }
  0x77   : > { %504 = vst [vmem:[#allocation1 + $0x7] ss:$9 sm:$0xff] %v1258_v37  ;;  %v1321_v26 = vld [vmem:[%s1720_s12 + $0x26] ss:$8 sm:$0x3]  ;;  %v326_v36 = vld [vmem:[%s2080_s3] sm:$0xff] }
  0x78   : > { %v1322_v29 = vld [vmem:[%s1720_s12 + $0x36] ss:$8 sm:$0x3]  ;;  %v1323_v30 = vld [vmem:[%s1720_s12 + $0x46] ss:$8 sm:$0x3] }
  0x79   : > { %v1325_v33 = vld [vmem:[%s1720_s12 + $0x66] ss:$8 sm:$0x3]  ;;  %v1326_v34 = vld [vmem:[%s1720_s12 + $0x76] ss:$8 sm:$0x3] }
  0x7a   : > { %v1327_v37 = vld [vmem:[%s1720_s12 + $0x7] ss:$8 sm:$0x3] }
  0x7e   : > { %v506_v38 = vld [vmem:[#allocation1 + $0x9] sm:$0xff]  ;;  %v505_v39 = vld [vmem:[#allocation1] sm:$0xff] }
  0x7f   : > { %548 = vmatpush.msra.mxu1 %v506_v38  ;;  %525 = vmatpush.msra.mxu0 %v505_v39  ;;  %758 = vst [vmem:[#allocation1] ss:$9 sm:$0xff] %v1279_v40  ;;  %v325_v38 = vld [vmem:[%s2079_s2 + $0x8] sm:$0xff]  ;;  %v1559_v39 = vmov 0  }
  0x80   : > { %760 = vst [vmem:[#allocation1 + $0x1] ss:$9 sm:$0xff] %v1280_v41  ;;  %1421 = vset.pattern.permute.xlu0 %v1559_v39  ;;  %v1328_v40 = vld [vmem:[%s1720_s12 + $0x17] ss:$8 sm:$0x3] }
  0x81   : > { %549 = vmatpush.msra.mxu1 %v479_v32  ;;  %526 = vmatpush.msra.mxu0 %v478_v31  ;;  %762 = vst [vmem:[#allocation1 + $0x2] ss:$9 sm:$0xff] %v1281_v42  ;;  %v1558_v31 = vmov 0.0   ;;  %v1324_v32 = vld [vmem:[%s1720_s12 + $0x56] ss:$8 sm:$0x3] }
  0x82   : > { %764 = vst [vmem:[#allocation1 + $0x3] ss:$9 sm:$0xff] %v1282_v43  ;;  %330 = vperm.xlu0 %1421, %v326_v36   ;;  %v1329_v41 = vld [vmem:[%s1720_s12 + $0x27] ss:$8 sm:$0x3]  ;;  %v266_v39 = vld [vmem:[%s1713_s23 + $0x18] sm:$0xff]  }
  0x83   : > { %550 = vmatpush.msra.mxu1 %v452_v22  ;;  %527 = vmatpush.msra.mxu0 %v451_v21  ;;  %766 = vst [vmem:[#allocation1 + $0x4] ss:$9 sm:$0xff] %v1283_v44  ;;  %v1316_v21 = vld [vmem:[%s1720_s12 + $0x55] ss:$8 sm:$0x3]  ;;  %v260_v36 = vld [vmem:[%s1713_s23] sm:$0xff]  }
  0x84   : > { %768 = vst [vmem:[#allocation1 + $0x5] ss:$9 sm:$0xff] %v1284_v45  ;;  %v1317_v22 = vld [vmem:[%s1720_s12 + $0x65] ss:$8 sm:$0x3] }
  0x85   : > { %551 = vmatpush.msra.mxu1 %v1739_v12  ;;  %528 = vmatpush.msra.mxu0 %v1737_v11  ;;  %770 = vst [vmem:[#allocation1 + $0x6] ss:$9 sm:$0xff] %v1285_v46  ;;  %v1308_v11 = vld [vmem:[%s1720_s12 + $0x54] ss:$8 sm:$0x3] }
  0x86   : > { %772 = vst [vmem:[#allocation1 + $0x7] ss:$9 sm:$0xff] %v1286_v47  ;;  %v1309_v12 = vld [vmem:[%s1720_s12 + $0x64] ss:$8 sm:$0x3] }
  0x87   : > { %552 = vmatpush.msra.mxu1 %v1558_v31  ;;  %529 = vmatpush.msra.mxu0 %v1558_v31  ;;  %v1330_v44 = vld [vmem:[%s1720_s12 + $0x37] ss:$8 sm:$0x3]  ;;  %v1331_v45 = vld [vmem:[%s1720_s12 + $0x47] ss:$8 sm:$0x3]  ;;  %292 = vst [vmem:[%s1880_s30] sm:$0xff] %v260_v36  }
  0x88   : > { %v1332_v46 = vld [vmem:[%s1720_s12 + $0x57] ss:$8 sm:$0x3]  ;;  %v1333_v47 = vld [vmem:[%s1720_s12 + $0x67] ss:$8 sm:$0x3] }
  0x89   : > { %553 = vmatpush.msra.mxu1 %v1558_v31  ;;  %530 = vmatpush.msra.mxu0 %v1558_v31  ;;  %298 = vst [vmem:[%s1880_s30 + $0x18] sm:$0xff] %v266_v39  }
  0x8b   : > { %554 = vmatpush.msra.mxu1 %v1558_v31  ;;  %531 = vmatpush.msra.mxu0 %v1558_v31 }
  0x8c   : > { %1261 = vmatmul.msk.f32.vlgmr.msra.gmra.mxu1 %vm509_vm0, %v324_v35  ;;  %1259 = vmatmul.msk.f32.vlgmr.msra.gmra.mxu0 %vm509_vm0, %v324_v35 }
  0x8d   : > { %v1775_v51 = vld [vmem:[#allocation1] sm:$0xff]  ;;  %v1777_v52 = vld [vmem:[#allocation1 + $0x9] sm:$0xff] }
  0x8e   : > { %785 = vst [vmem:[#allocation1] ss:$9 sm:$0xff] %v1287_v48  ;;  %v1334_v48 = vld [vmem:[%s1720_s12 + $0x77] ss:$8 sm:$0x3]  ;;  %s1498_s12 = scalar_lea.hbm %s1497_s0, 192 }
  0x8f   : > { %787 = vst [vmem:[#allocation1 + $0x1] ss:$9 sm:$0xff] %v1288_v49  ;;  %v327_v49 = vld [vmem:[%s2080_s3 + $0x8] sm:$0xff]  ;;  %p1499_p6 = scmp.ne.s32.totalorder %s1497_s0, %s1498_s12  ;;  %p1504_p2 = scmp.lt.s32.totalorder %s1502_s25, %s1498_s12 }
  0x90   : > { %789 = vst [vmem:[#allocation1 + $0x2] ss:$9 sm:$0xff] %v1289_v50  ;;  %335 = vperm.xlu0 %1421, %v327_v49  }
  0x91   : > { %791 = vst [vmem:[#allocation1 + $0x3] ss:$9 sm:$0xff] %v1290_v53  ;;  %p1500_p13 = pnand %p1499_p6, %p1637_p11  ;;  %p1505_p9 = por %p1504_p2, %p1503_p10 }
  0x92   : > { %793 = vst [vmem:[#allocation1 + $0x4] ss:$9 sm:$0xff] %v1291_v54 }
  0x93   : > { %795 = vst [vmem:[#allocation1 + $0x5] ss:$9 sm:$0xff] %v1292_v55  ;;  %p1501_p3 = pneg %p1500_p13 }
  0x94   : > { %797 = vst [vmem:[#allocation1 + $0x6] ss:$9 sm:$0xff] %v1293_v56  ;;  %1262 = vmatmul.msk.f32.gmra.mxu1 %vm509_vm0, %v325_v38  ;;  %1260 = vmatmul.msk.f32.gmra.mxu0 %vm509_vm0, %v325_v38 }
  0x95   : > { %799 = vst [vmem:[#allocation1 + $0x7] ss:$9 sm:$0xff] %v1294_v57  ;;  %p1506_p0 = pnand %p1505_p9, %p1501_p3 }
  0x9c   : > { %v1787_v61 = vld [vmem:[#allocation1] sm:$0xff]  ;;  %v1789_v62 = vld [vmem:[#allocation1 + $0x9] sm:$0xff] }
  0x9d   : > { %812 = vst [vmem:[#allocation1] ss:$9 sm:$0xff] %v1295_v58 }
  0x9e   : > { %814 = vst [vmem:[#allocation1 + $0x1] ss:$9 sm:$0xff] %v1296_v59 }
  0x9f   : > { %816 = vst [vmem:[#allocation1 + $0x2] ss:$9 sm:$0xff] %v1297_v60 }
  0xa0   : > { %818 = vst [vmem:[#allocation1 + $0x3] ss:$9 sm:$0xff] %v1298_v63 }
  0xa1   : > { %820 = vst [vmem:[#allocation1 + $0x4] ss:$9 sm:$0xff] %v1299_v0 }
  0xa2   : > { %822 = vst [vmem:[#allocation1 + $0x5] ss:$9 sm:$0xff] %v1300_v1 }
  0xa3   : > { %824 = vst [vmem:[#allocation1 + $0x6] ss:$9 sm:$0xff] %v1301_v2 }
  0xa4   : > { %826 = vst [vmem:[#allocation1 + $0x7] ss:$9 sm:$0xff] %v1302_v3 }
  0xab   : > { %v1799_v7 = vld [vmem:[#allocation1] sm:$0xff]  ;;  %v1801_v8 = vld [vmem:[#allocation1 + $0x9] sm:$0xff] }
  0xac   : > { %839 = vst [vmem:[#allocation1] ss:$9 sm:$0xff] %v1303_v4 }
  0xad   : > { %841 = vst [vmem:[#allocation1 + $0x1] ss:$9 sm:$0xff] %v1304_v5 }
  0xae   : > { %843 = vst [vmem:[#allocation1 + $0x2] ss:$9 sm:$0xff] %v1305_v6 }
  0xaf   : > { %845 = vst [vmem:[#allocation1 + $0x3] ss:$9 sm:$0xff] %v1306_v9 }
  0xb0   : > { %847 = vst [vmem:[#allocation1 + $0x4] ss:$9 sm:$0xff] %v1307_v10 }
  0xb1   : > { %849 = vst [vmem:[#allocation1 + $0x5] ss:$9 sm:$0xff] %v1308_v11 }
  0xb2   : > { %851 = vst [vmem:[#allocation1 + $0x6] ss:$9 sm:$0xff] %v1309_v12 }
  0xb3   : > { %853 = vst [vmem:[#allocation1 + $0x7] ss:$9 sm:$0xff] %v1310_v13 }
  0xba   : > { %v1811_v17 = vld [vmem:[#allocation1] sm:$0xff]  ;;  %v1813_v18 = vld [vmem:[#allocation1 + $0x9] sm:$0xff] }
  0xbb   : > { %866 = vst [vmem:[#allocation1] ss:$9 sm:$0xff] %v1311_v14 }
  0xbc   : > { %868 = vst [vmem:[#allocation1 + $0x1] ss:$9 sm:$0xff] %v1312_v15 }
  0xbd   : > { %870 = vst [vmem:[#allocation1 + $0x2] ss:$9 sm:$0xff] %v1313_v16 }
  0xbe   : > { %872 = vst [vmem:[#allocation1 + $0x3] ss:$9 sm:$0xff] %v1314_v19 }
  0xbf   : > { %874 = vst [vmem:[#allocation1 + $0x4] ss:$9 sm:$0xff] %v1315_v20 }
  0xc0   : > { %876 = vst [vmem:[#allocation1 + $0x5] ss:$9 sm:$0xff] %v1316_v21 }
  0xc1   : > { %878 = vst [vmem:[#allocation1 + $0x6] ss:$9 sm:$0xff] %v1317_v22 }
  0xc2   : > { %880 = vst [vmem:[#allocation1 + $0x7] ss:$9 sm:$0xff] %v1318_v23 }
  0xc9   : > { %v881_v27 = vld [vmem:[#allocation1] sm:$0xff]  ;;  %v882_v28 = vld [vmem:[#allocation1 + $0x9] sm:$0xff] }
  0xca   : > { %893 = vst [vmem:[#allocation1] ss:$9 sm:$0xff] %v1319_v24 }
  0xcb   : > { %895 = vst [vmem:[#allocation1 + $0x1] ss:$9 sm:$0xff] %v1320_v25 }
  0xcc   : > { %897 = vst [vmem:[#allocation1 + $0x2] ss:$9 sm:$0xff] %v1321_v26 }
  0xcd   : > { %899 = vst [vmem:[#allocation1 + $0x3] ss:$9 sm:$0xff] %v1322_v29 }
  0xce   : > { %901 = vst [vmem:[#allocation1 + $0x4] ss:$9 sm:$0xff] %v1323_v30 }
  0xcf   : > { %903 = vst [vmem:[#allocation1 + $0x5] ss:$9 sm:$0xff] %v1324_v32 }
  0xd0   : > { %905 = vst [vmem:[#allocation1 + $0x6] ss:$9 sm:$0xff] %v1325_v33 }
  0xd1   : > { %907 = vst [vmem:[#allocation1 + $0x7] ss:$9 sm:$0xff] %v1326_v34 }
  0xd8   : > { %v908_v42 = vld [vmem:[#allocation1] sm:$0xff]  ;;  %v909_v43 = vld [vmem:[#allocation1 + $0x9] sm:$0xff] }
  0xd9   : > { %920 = vst [vmem:[#allocation1] ss:$9 sm:$0xff] %v1327_v37  ;;  %v262_v37 = vld [vmem:[%s1713_s23 + $0x8] sm:$0xff]  }
  0xda   : > { %922 = vst [vmem:[#allocation1 + $0x1] ss:$9 sm:$0xff] %v1328_v40  ;;  %v268_v40 = vld [vmem:[%s1713_s23 + $0x20] sm:$0xff]  }
  0xdb   : > { %924 = vst [vmem:[#allocation1 + $0x2] ss:$9 sm:$0xff] %v1329_v41  ;;  %v270_v41 = vld [vmem:[%s1713_s23 + $0x28] sm:$0xff]  }
  0xdc   : > { %926 = vst [vmem:[#allocation1 + $0x3] ss:$9 sm:$0xff] %v1330_v44  ;;  %v276_v44 = vld [vmem:[%s1713_s23 + $0x40] sm:$0xff]  }
  0xdd   : > { %928 = vst [vmem:[#allocation1 + $0x4] ss:$9 sm:$0xff] %v1331_v45 }
  0xde   : > { %930 = vst [vmem:[#allocation1 + $0x5] ss:$9 sm:$0xff] %v1332_v46 }
  0xdf   : > { %932 = vst [vmem:[#allocation1 + $0x6] ss:$9 sm:$0xff] %v1333_v47  ;;  %v278_v47 = vld [vmem:[%s1713_s23 + $0x48] sm:$0xff]  }
  0xe0   : > { %934 = vst [vmem:[#allocation1 + $0x7] ss:$9 sm:$0xff] %v1334_v48 }
  0xe1   : > { %294 = vst [vmem:[%s1880_s30 + $0x8] sm:$0xff] %v262_v37  }
  0xe2   : > { %300 = vst [vmem:[%s1880_s30 + $0x20] sm:$0xff] %v268_v40  }
  0xe3   : > { %302 = vst [vmem:[%s1880_s30 + $0x28] sm:$0xff] %v270_v41  }
  0xe4   : > { %308 = vst [vmem:[%s1880_s30 + $0x40] sm:$0xff] %v276_v44  }
  0xe5   : > { %310 = vst [vmem:[%s1880_s30 + $0x48] sm:$0xff] %v278_v47  }
  0xe7   : > { %v935_v50 = vld [vmem:[#allocation1] sm:$0xff]  ;;  %v936_v53 = vld [vmem:[#allocation1 + $0x9] sm:$0xff] }
  0xe8   : > { %948 = vmatpush.msra.mxu2 %v935_v50  ;;  %971 = vmatpush.msra.mxu3 %v936_v53  ;;  %v280_v50 = vld [vmem:[%s1713_s23 + $0x50] sm:$0xff]   ;;  %v282_v53 = vld [vmem:[%s1713_s23 + $0x58] sm:$0xff]  }
  0xe9   : > { %312 = vst [vmem:[%s1880_s30 + $0x50] sm:$0xff] %v280_v50  }
  0xea   : > { %949 = vmatpush.msra.mxu2 %v908_v42  ;;  %972 = vmatpush.msra.mxu3 %v909_v43  ;;  %v272_v42 = vld [vmem:[%s1713_s23 + $0x30] sm:$0xff]   ;;  %v274_v43 = vld [vmem:[%s1713_s23 + $0x38] sm:$0xff]   ;;  %314 = vst [vmem:[%s1880_s30 + $0x58] sm:$0xff] %v282_v53  }
  0xeb   : > { %304 = vst [vmem:[%s1880_s30 + $0x30] sm:$0xff] %v272_v42  }
  0xec   : > { %950 = vmatpush.msra.mxu2 %v881_v27  ;;  %973 = vmatpush.msra.mxu3 %v882_v28  ;;  %306 = vst [vmem:[%s1880_s30 + $0x38] sm:$0xff] %v274_v43  }
  0xee   : > { %951 = vmatpush.msra.mxu2 %v1811_v17  ;;  %974 = vmatpush.msra.mxu3 %v1813_v18 }
  0xf0   : > { %952 = vmatpush.msra.mxu2 %v1799_v7  ;;  %975 = vmatpush.msra.mxu3 %v1801_v8 }
  0xf2   : > { %953 = vmatpush.msra.mxu2 %v1787_v61  ;;  %976 = vmatpush.msra.mxu3 %v1789_v62 }
  0xf4   : > { %954 = vmatpush.msra.mxu2 %v1775_v51  ;;  %977 = vmatpush.msra.mxu3 %v1777_v52  ;;  %v1864_v54 = vpop.permute.xlu0 %330  ;;  %v627_v51 = vlaneseq }
  0xf5   : > { %1335 = vmatmul.msk.f32.vlgmr.msra.gmra.mxu2 %vm509_vm0, %v324_v35  ;;  %1337 = vmatmul.msk.f32.vlgmr.msra.gmra.mxu3 %vm509_vm0, %v324_v35 }
  0xf6   : > { %vm1869_vm6 = vcmp.lt.s32.totalorder %v627_v51, 256 }
  0xfd   : > { %1336 = vmatmul.msk.f32.gmra.mxu2 %vm509_vm0, %v325_v38  ;;  %1338 = vmatmul.msk.f32.gmra.mxu3 %vm509_vm0, %v325_v38  ;;  %v264_v38 = vld [vmem:[%s1713_s23 + $0x10] sm:$0xff]  }
  0xfe   : > { %296 = vst [vmem:[%s1880_s30 + $0x10] sm:$0xff] %v264_v38  }
 0x102   : > { %v1877_v2 = vpop.permute.xlu0 %335 }
 0x109   : > { %v556_v55 = vpop.f32.mrf.mxu1  ;;  %v533_v56 = vpop.f32.mrf.mxu0 }
 0x10a   : > { %v557_v57 = vadd.f32 %v556_v55, %v1864_v54  ;;  %v534_v58 = vadd.f32 %v533_v56, %v1864_v54  ;;  %v284_v56 = vld [vmem:[%s1713_s23 + $0x60] sm:$0xff]  }
 0x10b   : > { %316 = vst [vmem:[%s1880_s30 + $0x60] sm:$0xff] %v284_v56  }
 0x10c   : > { %v563_v59 = vmax.f32 %v557_v57, 0.0  ;;  %v562_v52 = vmax.f32 %v534_v58, 0.0  ;;  %v286_v57 = vld [vmem:[%s1713_s23 + $0x68] sm:$0xff]  }
 0x10d   : > { %318 = vst [vmem:[%s1880_s30 + $0x68] sm:$0xff] %v286_v57  }
 0x10e   : > { %v570_v60 = vrot.slane %v563_v59, 7  ;;  %v288_v59 = vld [vmem:[%s1713_s23 + $0x70] sm:$0xff]  }
 0x10f   : > { %320 = vst [vmem:[%s1880_s30 + $0x70] sm:$0xff] %v288_v59  }
 0x110   : > { %v573_v62 = vsel %vm572_vm1, %v562_v52, %v570_v60  ;;  %v575_v63 = vsel %vm574_vm2, %v562_v52, %v570_v60  ;;  %v578_v0 = vsel %vm577_vm3, %v562_v52, %v570_v60  ;;  %v581_v1 = vsel %vm580_vm4, %v562_v52, %v570_v60 }
 0x111   : > { %v576_v3 = vrot.slane %v575_v63, 1  ;;  %v579_v4 = vrot.slane %v578_v0, 2  ;;  %v582_v5 = vrot.slane %v581_v1, 3  ;;  %v584_v6 = vsel %vm583_vm5, %v562_v52, %v570_v60  ;;  %1263 = vst.msk [vmem:[%s1880_s30 + $0x80] ss:$2 sm:$0x3] %vm1869_vm6, %v573_v62  ;;  %v559_v7 = vpop.f32.mrf.mxu1  ;;  %v536_v8 = vpop.f32.mrf.mxu0 }
 0x112   : > { %v585_v9 = vrot.slane %v584_v6, 4  ;;  %v587_v10 = vsel %vm586_vm7, %v562_v52, %v570_v60  ;;  %v590_v11 = vsel %vm589_vm8, %v562_v52, %v570_v60  ;;  %v593_v12 = vsel %vm592_vm9, %v570_v60, %v562_v52 }
 0x113   : > { %v588_v13 = vrot.slane %v587_v10, 5  ;;  %1264 = vst.msk [vmem:[%s1880_s30 + $0x84] ss:$2 sm:$0x3] %vm1869_vm6, %v576_v3  ;;  %v560_v14 = vadd.f32 %v559_v7, %v1877_v2  ;;  %v591_v15 = vrot.slane %v590_v11, 6  ;;  %v537_v16 = vadd.f32 %v536_v8, %v1877_v2 }
 0x114   : > { %1265 = vst.msk [vmem:[%s1880_s30 + $0x88] ss:$2 sm:$0x3] %vm1869_vm6, %v579_v4  ;;  %v594_v17 = vrot.slane %v593_v12, 7 }
 0x115   : > { %1266 = vst.msk [vmem:[%s1880_s30 + $0x8c] ss:$2 sm:$0x3] %vm1869_vm6, %v582_v5  ;;  %v565_v18 = vmax.f32 %v560_v14, 0.0  ;;  %v564_v19 = vmax.f32 %v537_v16, 0.0  ;;  %v290_v16 = vld [vmem:[%s1713_s23 + $0x78] sm:$0xff]  }
 0x116   : > { %1267 = vst.msk [vmem:[%s1880_s30 + $0x90] ss:$2 sm:$0x3] %vm1869_vm6, %v585_v9  ;;  %s1074_s23 = scalar_lea.sflag [#allocation4], %s1709_s14 }
 0x117   : > { %1268 = vst.msk [vmem:[%s1880_s30 + $0x94] ss:$2 sm:$0x3] %vm1869_vm6, %v588_v13  ;;  %v571_v20 = vrot.slane %v565_v18, 7 }
 0x118   : > { %1269 = vst.msk [vmem:[%s1880_s30 + $0x98] ss:$2 sm:$0x3] %vm1869_vm6, %v591_v15 }
 0x119   : > { %1270 = vst.msk [vmem:[%s1880_s30 + $0x9c] ss:$2 sm:$0x3] %vm1869_vm6, %v594_v17  ;;  %v595_v21 = vsel %vm572_vm1, %v564_v19, %v571_v20  ;;  %v596_v22 = vsel %vm574_vm2, %v564_v19, %v571_v20  ;;  %v598_v23 = vsel %vm577_vm3, %v564_v19, %v571_v20  ;;  %v600_v24 = vsel %vm580_vm4, %v564_v19, %v571_v20 }
 0x11a   : > { %v597_v25 = vrot.slane %v596_v22, 1  ;;  %v599_v26 = vrot.slane %v598_v23, 2  ;;  %v601_v27 = vrot.slane %v600_v24, 3  ;;  %v602_v28 = vsel %vm583_vm5, %v564_v19, %v571_v20  ;;  %1271 = vst.msk [vmem:[%s1880_s30 + $0xa0] ss:$2 sm:$0x3] %vm1869_vm6, %v595_v21 }
 0x11b   : > { %v603_v29 = vrot.slane %v602_v28, 4  ;;  %v604_v30 = vsel %vm586_vm7, %v564_v19, %v571_v20  ;;  %v606_v31 = vsel %vm589_vm8, %v564_v19, %v571_v20  ;;  %v608_v32 = vsel %vm592_vm9, %v571_v20, %v564_v19  ;;  %322 = vst [vmem:[%s1880_s30 + $0x78] sm:$0xff] %v290_v16  }
 0x11c   : > { %v605_v33 = vrot.slane %v604_v30, 5  ;;  %1272 = vst.msk [vmem:[%s1880_s30 + $0xa4] ss:$2 sm:$0x3] %vm1869_vm6, %v597_v25  ;;  %v607_v34 = vrot.slane %v606_v31, 6  ;;  %v609_v35 = vrot.slane %v608_v32, 7 }
 0x11d   : > { %1273 = vst.msk [vmem:[%s1880_s30 + $0xa8] ss:$2 sm:$0x3] %vm1869_vm6, %v599_v26 }
 0x11e   : > { %1274 = vst.msk [vmem:[%s1880_s30 + $0xac] ss:$2 sm:$0x3] %vm1869_vm6, %v601_v27 }
 0x11f   : > { %1275 = vst.msk [vmem:[%s1880_s30 + $0xb0] ss:$2 sm:$0x3] %vm1869_vm6, %v603_v29 }
 0x120   : > { %1276 = vst.msk [vmem:[%s1880_s30 + $0xb4] ss:$2 sm:$0x3] %vm1869_vm6, %v605_v33 }
 0x121   : > { %1277 = vst.msk [vmem:[%s1880_s30 + $0xb8] ss:$2 sm:$0x3] %vm1869_vm6, %v607_v34 }
 0x122   : > { %1278 = vst.msk [vmem:[%s1880_s30 + $0xbc] ss:$2 sm:$0x3] %vm1869_vm6, %v609_v35 }
 0x178   : > { %v956_v45 = vpop.f32.mrf.mxu2  ;;  %v979_v46 = vpop.f32.mrf.mxu3 }
 0x179   : > { %v957_v48 = vadd.f32 %v956_v45, %v1864_v54  ;;  %v980_v49 = vadd.f32 %v979_v46, %v1864_v54 }
 0x17b   : > { %v986_v55 = vmax.f32 %v980_v49, 0.0  ;;  %v985_v58 = vmax.f32 %v957_v48, 0.0 }
 0x17d   : > { %v993_v51 = vrot.slane %v986_v55, 7 }
 0x17f   : > { %v995_v52 = vsel %vm572_vm1, %v985_v58, %v993_v51  ;;  %v996_v54 = vsel %vm574_vm2, %v985_v58, %v993_v51  ;;  %v998_v60 = vsel %vm577_vm3, %v985_v58, %v993_v51  ;;  %v1000_v62 = vsel %vm580_vm4, %v985_v58, %v993_v51 }
 0x180   : > { %v997_v63 = vrot.slane %v996_v54, 1  ;;  %v999_v0 = vrot.slane %v998_v60, 2  ;;  %v1001_v1 = vrot.slane %v1000_v62, 3  ;;  %v1002_v3 = vsel %vm583_vm5, %v985_v58, %v993_v51  ;;  %1339 = vst.msk [vmem:[%s1880_s30 + $0x81] ss:$2 sm:$0x3] %vm1869_vm6, %v995_v52  ;;  %v959_v4 = vpop.f32.mrf.mxu2  ;;  %v982_v5 = vpop.f32.mrf.mxu3 }
 0x181   : > { %v1003_v6 = vrot.slane %v1002_v3, 4  ;;  %v1004_v7 = vsel %vm586_vm7, %v985_v58, %v993_v51  ;;  %v1006_v8 = vsel %vm589_vm8, %v985_v58, %v993_v51  ;;  %v1008_v9 = vsel %vm592_vm9, %v993_v51, %v985_v58 }
 0x182   : > { %v1005_v10 = vrot.slane %v1004_v7, 5  ;;  %1340 = vst.msk [vmem:[%s1880_s30 + $0x85] ss:$2 sm:$0x3] %vm1869_vm6, %v997_v63  ;;  %v1007_v11 = vrot.slane %v1006_v8, 6  ;;  %v960_v12 = vadd.f32 %v959_v4, %v1877_v2  ;;  %v983_v13 = vadd.f32 %v982_v5, %v1877_v2 }
 0x183   : > { %1341 = vst.msk [vmem:[%s1880_s30 + $0x89] ss:$2 sm:$0x3] %vm1869_vm6, %v999_v0  ;;  %v1009_v14 = vrot.slane %v1008_v9, 7 }
 0x184   : > { %1342 = vst.msk [vmem:[%s1880_s30 + $0x8d] ss:$2 sm:$0x3] %vm1869_vm6, %v1001_v1  ;;  %v988_v15 = vmax.f32 %v983_v13, 0.0  ;;  %v987_v17 = vmax.f32 %v960_v12, 0.0 }
 0x185   : > { %1343 = vst.msk [vmem:[%s1880_s30 + $0x91] ss:$2 sm:$0x3] %vm1869_vm6, %v1003_v6 }
 0x186   : > { %1344 = vst.msk [vmem:[%s1880_s30 + $0x95] ss:$2 sm:$0x3] %vm1869_vm6, %v1005_v10  ;;  %v994_v2 = vrot.slane %v988_v15, 7 }
 0x187   : > { %1345 = vst.msk [vmem:[%s1880_s30 + $0x99] ss:$2 sm:$0x3] %vm1869_vm6, %v1007_v11 }
 0x188   : > { %1346 = vst.msk [vmem:[%s1880_s30 + $0x9d] ss:$2 sm:$0x3] %vm1869_vm6, %v1009_v14  ;;  %v1010_v18 = vsel %vm572_vm1, %v987_v17, %v994_v2  ;;  %v1011_v19 = vsel %vm574_vm2, %v987_v17, %v994_v2  ;;  %v1013_v20 = vsel %vm577_vm3, %v987_v17, %v994_v2  ;;  %v1015_v21 = vsel %vm580_vm4, %v987_v17, %v994_v2 }
 0x189   : > { %v1012_v22 = vrot.slane %v1011_v19, 1  ;;  %v1014_v23 = vrot.slane %v1013_v20, 2  ;;  %v1016_v24 = vrot.slane %v1015_v21, 3  ;;  %v1017_v25 = vsel %vm583_vm5, %v987_v17, %v994_v2  ;;  %1347 = vst.msk [vmem:[%s1880_s30 + $0xa1] ss:$2 sm:$0x3] %vm1869_vm6, %v1010_v18 }
 0x18a   : > { %v1018_v26 = vrot.slane %v1017_v25, 4  ;;  %v1019_v27 = vsel %vm586_vm7, %v987_v17, %v994_v2  ;;  %v1021_v28 = vsel %vm589_vm8, %v987_v17, %v994_v2  ;;  %v1023_v29 = vsel %vm592_vm9, %v994_v2, %v987_v17 }
 0x18b   : > { %v1020_v30 = vrot.slane %v1019_v27, 5  ;;  %1348 = vst.msk [vmem:[%s1880_s30 + $0xa5] ss:$2 sm:$0x3] %vm1869_vm6, %v1012_v22  ;;  %v1022_v31 = vrot.slane %v1021_v28, 6  ;;  %v1024_v32 = vrot.slane %v1023_v29, 7 }
 0x18c   : > { %1349 = vst.msk [vmem:[%s1880_s30 + $0xa9] ss:$2 sm:$0x3] %vm1869_vm6, %v1014_v23 }
 0x18d   : > { %1350 = vst.msk [vmem:[%s1880_s30 + $0xad] ss:$2 sm:$0x3] %vm1869_vm6, %v1016_v24 }
 0x18e   : > { %1351 = vst.msk [vmem:[%s1880_s30 + $0xb1] ss:$2 sm:$0x3] %vm1869_vm6, %v1018_v26 }
 0x18f   : > { %1352 = vst.msk [vmem:[%s1880_s30 + $0xb5] ss:$2 sm:$0x3] %vm1869_vm6, %v1020_v30 }
 0x190   : > { %1353 = vst.msk [vmem:[%s1880_s30 + $0xb9] ss:$2 sm:$0x3] %vm1869_vm6, %v1022_v31 }
 0x191   : > { %1354 = vst.msk [vmem:[%s1880_s30 + $0xbd] ss:$2 sm:$0x3] %vm1869_vm6, %v1024_v32 }
 0x192   : > { %1509 = shalt.err (!%p1506_p0)
}
 0x193   : > { %s1560_s14 = smov 64   ;;  %s1561_s9 = smov 4  }
 0x194   : > { %1366 = dma.vmem_to_hbm [thread:$0]  (%p1637_p11), %s1087_s20, 3072, %s1089_s24, %s1074_s23, %s1560_s14, %s1560_s14, %s1561_s9  }
 0x195 PF: > { %s1103_s11 = sand.u32 1, %s1540_s15   ;;  %p2093_p1 = scmp.ge.s32.totalorder %s1552_s18, 2 }
 0x196   : > { %s1104_s13 = scalar_lea.sflag [#allocation4], %s1103_s11 }
 0x197   : > { %p1376_p4 = pnand %p2093_p1, %p1641_p12 }
 0x199   : > { %p1377_p7 = pneg %p1376_p4 }
 0x19b   : > { %1535 = dma.done.wait (%p1377_p7), %s1104_s13, 3072  }
 0x19c   : > { %1537 = vsyncadd (%p1377_p7), %s1104_s13, 4294964224  ;;  %s2094_s8 = sld [smem:[#allocation11_spill]]  ;;  %p20_p5 = scmp.ge.s32.totalorder %s1612_s21, 4  }
 0x19d   : > { %s2095_s15 = smov %s1544_s16  ;;  %s2096_s16 = smov %s1548_s17 }
 0x19e   : > { %s2098_s18 = smov %s1612_s21  ;;  %22 = sbr.rel (!%p20_p5) target bundleno = 9 (0x9), region = 266 }
 0x1a2   : > { %s2097_s17 = smov %s2094_s8 }
 0x1a3   :  { %1110 = vsyncpa [#allocation3], 1 }
 0x1a4   :  { %1112 = vsyncpa [#allocation3 + $0x1], 1 }
 0x1a5   :  { %1113 = vsyncpa [#allocation6], 1 }
 0x1a6   :  { %1115 = vsyncpa [#allocation6 + $0x1], 1 }
 0x1a7   :  { %1116 = vsyncpa [#allocation4], 1 }
 0x1a8   :  { %1118 = vsyncpa [#allocation4 + $0x1], 1 }

</bundles_post_ra>
